<compile_context>
chip_gen: v7x
topology: tpu7x:2x2x1
jax: 0.10.0
libtpu: 0.0.40
codegen_flags: <defaults>
</compile_context>

<pallas_src>
import jax
import jax.numpy as jnp
from jax.experimental import pallas as pl
from jax.experimental.pallas import tpu as pltpu

LANE = 128               # per-branch lane slot (geo -> lanes [0,128), time -> [128,256))
HIDDEN = 64              # logical hidden dim of each adapter (nn.Linear(dim, 64))
PACKED_IN = 2 * LANE     # 256 packed input/output lanes
PACKED_HID = 2 * HIDDEN  # 128 packed hidden lanes (geo hidden | time hidden)


def _adapter_kernel(x_ref, w1_ref, b1_ref, w2_ref, b2_ref, o_ref):
    """relu(x @ W1 + b1) @ W2 + b2 for both branches at once (block-diagonal W1/W2)."""
    x = x_ref[...]                                                     # [B, 256]
    h = jnp.dot(x, w1_ref[...], preferred_element_type=jnp.float32)   # [B, 128]
    h = jnp.maximum(h + b1_ref[...], 0.0)                             # bias + ReLU (VPU)
    y = jnp.dot(h, w2_ref[...], preferred_element_type=jnp.float32)   # [B, 256]
    o_ref[...] = (y + b2_ref[...]).astype(o_ref.dtype)


def pack_adapter_params(geo_params, time_params):
    """Pack both adapters' weights/biases block-diagonally. Call ONCE (init time)."""
    gw1, gb1, gw2, gb2 = geo_params    # gw1:[Dg,64] gb1:[1,64] gw2:[64,Dg] gb2:[1,Dg]
    tw1, tb1, tw2, tb2 = time_params
    geo_dim = gw1.shape[0]
    time_dim = tw1.shape[0]

    w1 = jnp.zeros((PACKED_IN, PACKED_HID), jnp.float32)
    w1 = w1.at[:geo_dim, :HIDDEN].set(gw1)
    w1 = w1.at[LANE:LANE + time_dim, HIDDEN:].set(tw1)

    b1 = jnp.zeros((1, PACKED_HID), jnp.float32)
    b1 = b1.at[:, :HIDDEN].set(gb1)
    b1 = b1.at[:, HIDDEN:].set(tb1)

    w2 = jnp.zeros((PACKED_HID, PACKED_IN), jnp.float32)
    w2 = w2.at[:HIDDEN, :geo_dim].set(gw2)
    w2 = w2.at[HIDDEN:, LANE:LANE + time_dim].set(tw2)

    b2 = jnp.zeros((1, PACKED_IN), jnp.float32)
    b2 = b2.at[:, :geo_dim].set(gb2)
    b2 = b2.at[:, LANE:LANE + time_dim].set(tb2)

    return w1, b1, w2, b2


@jax.jit
def geo_time_adapter(geo_features, time_features, packed_params):
    """Fused forward of GeoTimeAdapter -> (adapted_geo, adapted_time)."""
    B, geo_dim = geo_features.shape
    Bt, time_dim = time_features.shape
    assert Bt == B
    B_pad = ((B + 7) // 8) * 8          # sublane multiple
    w1, b1, w2, b2 = packed_params

    # Per-call packing touches only the tiny activation tensors.
    x = jnp.zeros((B_pad, PACKED_IN), jnp.float32)
    x = x.at[:B, :geo_dim].set(geo_features)
    x = x.at[:B, LANE:LANE + time_dim].set(time_features)

    vmem = pl.BlockSpec(memory_space=pltpu.MemorySpace.VMEM)
    out = pl.pallas_call(
        _adapter_kernel,
        out_shape=jax.ShapeDtypeStruct((B_pad, PACKED_IN), jnp.float32),
        in_specs=[vmem, vmem, vmem, vmem, vmem],
        out_specs=vmem,
    )(x, w1, b1, w2, b2)

    adapted_geo = out[:B, :geo_dim]
    adapted_time = out[:B, LANE:LANE + time_dim]
    return adapted_geo, adapted_time


def init_adapter_params(key, dim, hidden=HIDDEN):
    """Deterministic init mirroring nn.Linear(dim, 64), nn.Linear(64, dim).

    PyTorch Linear weight is [out, in]; stored transposed as [in, out] so the
    kernel computes x @ W (same math as x @ W_pt.T)."""
    k1, k2, k3, k4 = jax.random.split(key, 4)
    bound1 = 1.0 / jnp.sqrt(dim)
    bound2 = 1.0 / jnp.sqrt(hidden)
    w1 = jax.random.uniform(k1, (dim, hidden), jnp.float32, -bound1, bound1)
    b1 = jax.random.uniform(k2, (1, hidden), jnp.float32, -bound1, bound1)
    w2 = jax.random.uniform(k3, (hidden, dim), jnp.float32, -bound2, bound2)
    b2 = jax.random.uniform(k4, (1, dim), jnp.float32, -bound2, bound2)
    return w1, b1, w2, b2


if __name__ == "__main__":
    key = jax.random.PRNGKey(0)
    k_geo_x, k_time_x, k_geo_p, k_time_p = jax.random.split(key, 4)

    batch = 8
    geo_dim = 32
    time_dim = 16

    geo_features = jax.random.normal(k_geo_x, (batch, geo_dim), jnp.float32)
    time_features = jax.random.normal(k_time_x, (batch, time_dim), jnp.float32)

    geo_params = init_adapter_params(k_geo_p, geo_dim)
    time_params = init_adapter_params(k_time_p, time_dim)

    # One-time packing (init-time cost, not per-call).
    packed_params = jax.tree_util.tree_map(
        jax.block_until_ready, pack_adapter_params(geo_params, time_params))

    adapted_geo, adapted_time = geo_time_adapter(
        geo_features, time_features, packed_params)
    jax.block_until_ready((adapted_geo, adapted_time))

    # Pure-JAX reference (same math as the PyTorch module).
    def ref(x, p):
        w1, b1, w2, b2 = p
        return jnp.maximum(x @ w1 + b1, 0.0) @ w2 + b2

    assert adapted_geo.shape == (batch, geo_dim)
    assert adapted_time.shape == (batch, time_dim)
    assert jnp.allclose(adapted_geo, ref(geo_features, geo_params), atol=1e-5)
    assert jnp.allclose(adapted_time, ref(time_features, time_params), atol=1e-5)

    print("KERNEL_OK")
</pallas_src>

<mosaic_0001>
module attributes {stable_mosaic.version = 11 : i64} {
  func.func @_adapter_kernel(%arg0: memref<8x256xf32, #tpu.memory_space<vmem>>, %arg1: memref<256x128xf32, #tpu.memory_space<vmem>>, %arg2: memref<1x128xf32, #tpu.memory_space<vmem>>, %arg3: memref<128x256xf32, #tpu.memory_space<vmem>>, %arg4: memref<1x256xf32, #tpu.memory_space<vmem>>, %arg5: memref<8x256xf32, #tpu.memory_space<vmem>>) attributes {dimension_semantics = [], scalar_prefetch = 0 : i64, scratch_operands = 0 : i64, tpu.core_type = #tpu.core_type<tc>} {
    %c0 = arith.constant 0 : index
    %c0_0 = arith.constant 0 : index
    %0 = vector.load %arg0[%c0, %c0_0] : memref<8x256xf32, #tpu.memory_space<vmem>>, vector<8x256xf32>
    %c0_1 = arith.constant 0 : index
    %c0_2 = arith.constant 0 : index
    %1 = vector.load %arg1[%c0_1, %c0_2] : memref<256x128xf32, #tpu.memory_space<vmem>>, vector<256x128xf32>
    %cst = arith.constant dense<0.000000e+00> : vector<8x128xf32>
    %2 = tpu.matmul %0, %1, %cst {dimension_numbers = #tpu.dot_dimension_numbers<[1], [0], [0], [1], [0, 0, 1, 1], [], []>} : vector<8x256xf32>, vector<256x128xf32>, vector<8x128xf32> -> vector<8x128xf32>
    %c0_3 = arith.constant 0 : index
    %c0_4 = arith.constant 0 : index
    %3 = vector.load %arg2[%c0_3, %c0_4] : memref<1x128xf32, #tpu.memory_space<vmem>>, vector<1x128xf32>
    %4 = vector.broadcast %3 : vector<1x128xf32> to vector<8x128xf32>
    %5 = arith.addf %2, %4 : vector<8x128xf32>
    %cst_5 = arith.constant 0.000000e+00 : f32
    %6 = vector.broadcast %cst_5 : f32 to vector<8x128xf32>
    %7 = arith.maximumf %5, %6 : vector<8x128xf32>
    %c0_6 = arith.constant 0 : index
    %c0_7 = arith.constant 0 : index
    %8 = vector.load %arg3[%c0_6, %c0_7] : memref<128x256xf32, #tpu.memory_space<vmem>>, vector<128x256xf32>
    %cst_8 = arith.constant dense<0.000000e+00> : vector<8x256xf32>
    %9 = tpu.matmul %7, %8, %cst_8 {dimension_numbers = #tpu.dot_dimension_numbers<[1], [0], [0], [1], [0, 0, 1, 1], [], []>} : vector<8x128xf32>, vector<128x256xf32>, vector<8x256xf32> -> vector<8x256xf32>
    %c0_9 = arith.constant 0 : index
    %c0_10 = arith.constant 0 : index
    %10 = vector.load %arg4[%c0_9, %c0_10] : memref<1x256xf32, #tpu.memory_space<vmem>>, vector<1x256xf32>
    %11 = vector.broadcast %10 : vector<1x256xf32> to vector<8x256xf32>
    %12 = arith.addf %9, %11 : vector<8x256xf32>
    %c0_11 = arith.constant 0 : index
    %c0_12 = arith.constant 0 : index
    %13 = vector.load %arg5[%c0_11, %c0_12] : memref<8x256xf32, #tpu.memory_space<vmem>>, vector<8x256xf32>
    tpu.vector_store %arg5[%c0_11, %c0_12], %12 {strides = array<i32>} : memref<8x256xf32, #tpu.memory_space<vmem>>, vector<8x256xf32>,
    return
  }
}

</mosaic_0001>

<bundles_post_ra>
// kernel: geo_time_adapter.1
= control target key start
LH: loop header
LB: loop body
LE: loop exit
PB: predicated region body
PF: predicated region fallthrough
CT: control target
= control target key end

     0   :  { %10 = vsyncpa [#allocation3], 0  ;;  %s517_s0 = inlined_call_operand.vmem [shape: f32[8,256], index: 0, kind: input, shape index: {}]   ;;  %s518_s1 = inlined_call_operand.hbm [shape: f32[256,128], index: 1, kind: input, shape index: {}]   ;;  %s519_s2 = inlined_call_operand.vmem [shape: f32[1,128], index: 2, kind: input, shape index: {}]   ;;  %s520_s3 = inlined_call_operand.hbm [shape: f32[128,256], index: 3, kind: input, shape index: {}]   ;;  %s521_s4 = inlined_call_operand.vmem [shape: f32[1,256], index: 4, kind: input, shape index: {}]   ;;  %s522_s5 = inlined_call_operand.vmem [shape: f32[8,256], index: 5, kind: output, shape index: {}]  }
   0x1   :  { %11 = vsyncpa [#allocation5], 0  ;;  %s438_s18 = smov [#allocation2]   ;;  %s390_s22 = scalar_lea.hbm %s518_s1, 4096 }
   0x2   :  { %s19_s19 = sshll.u32 %s438_s18, 4  ;;  %p391_p0 = scmp.ne.s32.totalorder %s518_s1, %s390_s22  ;;  %s20_s19 = int_to_ptr.vmem [resolvable:$true] %s19_s19 }
   0x3   :  { %p394_p1 = scmp.lt.u32.totalorder %s390_s22, %s518_s1 }
   0x5   :  { %p396_p2 = pnand %p394_p1, %p391_p0 }
   0x7   :  { %399 = shalt.err (!%p396_p2)
}
   0x8   :  { %s400_s27 = scalar_lea.vmem %s20_s19, 4096  ;;  %p405_p4 = scmp.lt.s32.totalorder %s20_s19, %s20_s19 }
   0x9   :  { %p401_p3 = scmp.ne.s32.totalorder %s20_s19, %s400_s27  ;;  %p406_p5 = scmp.lt.s32.totalorder %s400_s27, %s400_s27 }
   0xb   :  { %p407_p6 = por %p406_p5, %p405_p4 }
   0xd   :  { %p408_p7 = pnand %p407_p6, %p401_p3 }
   0xf   :  { %411 = shalt.err (!%p408_p7)
}
  0x10   :  { %s439_s28 = smov 128   ;;  %s440_s29 = smov 8  }
  0x11   :  { %25 = dma.hbm_to_vmem [thread:$0]  %s518_s1, 4096, %s20_s19, [#allocation3], %s439_s28, %s439_s28, %s440_s29  }
  0x12   :  { %s441_s7 = smov [#allocation4]   ;;  %s412_s11 = scalar_lea.hbm %s520_s3, 4096 }
  0x13   :  { %s33_s8 = sshll.u32 %s441_s7, 4  ;;  %p413_p8 = scmp.ne.s32.totalorder %s520_s3, %s412_s11  ;;  %s34_s8 = int_to_ptr.vmem [resolvable:$true] %s33_s8 }
  0x14   :  { %p416_p9 = scmp.lt.u32.totalorder %s412_s11, %s520_s3 }
  0x16   :  { %p418_p10 = pnand %p416_p9, %p413_p8 }
  0x18   :  { %421 = shalt.err (!%p418_p10)
}
  0x19   :  { %s422_s16 = scalar_lea.vmem %s34_s8, 4096  ;;  %p427_p12 = scmp.lt.s32.totalorder %s34_s8, %s34_s8 }
  0x1a   :  { %p423_p11 = scmp.ne.s32.totalorder %s34_s8, %s422_s16  ;;  %p428_p13 = scmp.lt.s32.totalorder %s422_s16, %s422_s16 }
  0x1c   :  { %p429_p0 = por %p428_p13, %p427_p12 }
  0x1e   :  { %p430_p1 = pnand %p429_p0, %p423_p11 }
  0x20   :  { %433 = shalt.err (!%p430_p1)
}
  0x21   :  { %s442_s1 = smov 256   ;;  %s443_s17 = smov 16  }
  0x22   :  { %39 = dma.hbm_to_vmem [thread:$0]  %s520_s3, 4096, %s34_s8, [#allocation5], %s442_s1, %s442_s1, %s443_s17  }
  0x23   :  { %434 = dma.done.wait [#allocation3], 4096  }
  0x24   :  { %435 = vsyncadd [#allocation3], 4294963200 }
  0x25   :  { %436 = dma.done.wait [#allocation5], 4096  }
  0x26   :  { %437 = vsyncadd [#allocation5], 4294963200  ;;  %v66_v0 = vld [vmem:[#allocation2 + $0x80] sm:$0xff]  ;;  %v67_v1 = vld [vmem:[#allocation2 + $0x88] sm:$0xff] }
  0x27   :  { %v50_v2 = vld [vmem:[#allocation2] sm:$0xff]  ;;  %v319_v3 = vpack.c.bf16 %v67_v1, %v66_v0  ;;  %v51_v4 = vld [vmem:[#allocation2 + $0x8] sm:$0xff]  ;;  %v68_v5 = vld [vmem:[#allocation2 + $0x90] sm:$0xff] }
  0x28   :  { %v69_v6 = vld [vmem:[#allocation2 + $0x98] sm:$0xff]  ;;  %v321_v7 = vpack.c.bf16 %v51_v4, %v50_v2  ;;  %v52_v9 = vld [vmem:[#allocation2 + $0x10] sm:$0xff]  ;;  %v70_v11 = vld [vmem:[#allocation2 + $0xa0] sm:$0xff] }
  0x29   :  { %v323_v8 = vpack.c.bf16 %v69_v6, %v68_v5  ;;  %v53_v10 = vld [vmem:[#allocation2 + $0x18] sm:$0xff]  ;;  %320 = vmatprep.subr.bf16.mxu0 %v319_v3  ;;  %v71_v12 = vld [vmem:[#allocation2 + $0xa8] sm:$0xff]  ;;  %v54_v15 = vld [vmem:[#allocation2 + $0x20] sm:$0xff] }
  0x2a   :  { %322 = vmatpush3.bf16.msra.mxu0 %v321_v7  ;;  %v325_v13 = vpack.c.bf16 %v53_v10, %v52_v9  ;;  %v327_v14 = vpack.c.bf16 %v71_v12, %v70_v11  ;;  %v55_v16 = vld [vmem:[#allocation2 + $0x28] sm:$0xff]  ;;  %v72_v17 = vld [vmem:[#allocation2 + $0xb0] sm:$0xff]  ;;  %v73_v18 = vld [vmem:[#allocation2 + $0xb8] sm:$0xff] }
  0x2b   :  { %324 = vmatprep.subr.bf16.mxu0 %v323_v8  ;;  %v329_v19 = vpack.c.bf16 %v55_v16, %v54_v15  ;;  %v331_v20 = vpack.c.bf16 %v73_v18, %v72_v17  ;;  %v56_v21 = vld [vmem:[#allocation2 + $0x30] sm:$0xff]  ;;  %v57_v22 = vld [vmem:[#allocation2 + $0x38] sm:$0xff]  ;;  %v74_v23 = vld [vmem:[#allocation2 + $0xc0] sm:$0xff] }
  0x2c   :  { %v75_v24 = vld [vmem:[#allocation2 + $0xc8] sm:$0xff]  ;;  %v58_v26 = vld [vmem:[#allocation2 + $0x40] sm:$0xff]  ;;  %v163_v29 = vld [vmem:[#allocation4 + $0x18] sm:$0xff]  ;;  %v333_v30 = vpack.c.bf16 %v57_v22, %v56_v21 }
  0x2d   :  { %v49_v25 = vld [vmem:[%s517_s0 + $0x8] sm:$0xff]  ;;  %v76_v31 = vld [vmem:[#allocation2 + $0xd0] sm:$0xff]  ;;  %v160_v33 = vld [vmem:[#allocation4] sm:$0xff]  ;;  %v335_v36 = vpack.c.bf16 %v75_v24, %v74_v23 }
  0x2e   :  { %326 = vmatpush3.bf16.msra.mxu0 %v325_v13  ;;  %v59_v27 = vld [vmem:[#allocation2 + $0x48] sm:$0xff]  ;;  %153 = vmatprep.mubr.f32.mxu0 %v49_v25  ;;  %v162_v34 = vld [vmem:[#allocation4 + $0x10] sm:$0xff]  ;;  %v167_v38 = vld [vmem:[#allocation4 + $0x38] sm:$0xff] }
  0x2f   :  { %328 = vmatprep.subr.bf16.mxu0 %v327_v14  ;;  %v161_v28 = vld [vmem:[#allocation4 + $0x8] sm:$0xff]  ;;  %v353_v37 = vpack.c.bf16 %v162_v34, %v160_v33  ;;  %v164_v39 = vld [vmem:[#allocation4 + $0x20] sm:$0xff]  ;;  %v166_v40 = vld [vmem:[#allocation4 + $0x30] sm:$0xff]  ;;  %v337_v46 = vpack.c.bf16 %v59_v27, %v58_v26  ;;  %v444_v34 = vmov 0.0  }
  0x30   :  { %v351_v32 = vpack.c.bf16 %v163_v29, %v161_v28  ;;  %v165_v35 = vld [vmem:[#allocation4 + $0x28] sm:$0xff]  ;;  %v77_v41 = vld [vmem:[#allocation2 + $0xd8] sm:$0xff]  ;;  %v357_v45 = vpack.c.bf16 %v166_v40, %v164_v39  ;;  %v60_v47 = vld [vmem:[#allocation2 + $0x50] sm:$0xff]  ;;  %268 = vmatprep.mubr.f32.mxu1 %v444_v34 }
  0x31   :  { %v355_v42 = vpack.c.bf16 %v167_v38, %v165_v35  ;;  %v169_v43 = vld [vmem:[#allocation4 + $0x48] sm:$0xff]  ;;  %v171_v44 = vld [vmem:[#allocation4 + $0x58] sm:$0xff]  ;;  %v168_v49 = vld [vmem:[#allocation4 + $0x40] sm:$0xff]  ;;  %v339_v51 = vpack.c.bf16 %v77_v41, %v76_v31  ;;  %v194_v41 = vlaneseq }
  0x32   :  { %330 = vmatpush3.bf16.msra.mxu0 %v329_v19  ;;  %352 = vmatprep.subr.bf16.mxu1 %v351_v32  ;;  %v359_v48 = vpack.c.bf16 %v171_v44, %v169_v43  ;;  %v170_v50 = vld [vmem:[#allocation4 + $0x50] sm:$0xff]  ;;  %v61_v52 = vld [vmem:[#allocation2 + $0x58] sm:$0xff]  ;;  %v173_v53 = vld [vmem:[#allocation4 + $0x68] sm:$0xff] }
  0x33   :  { %332 = vmatprep.subr.bf16.mxu0 %v331_v20  ;;  %354 = vmatpush1.bf16.msra.mxu1 %v353_v37  ;;  %v175_v54 = vld [vmem:[#allocation4 + $0x78] sm:$0xff]  ;;  %v78_v55 = vld [vmem:[#allocation2 + $0xe0] sm:$0xff]  ;;  %v79_v56 = vld [vmem:[#allocation2 + $0xe8] sm:$0xff]  ;;  %v361_v57 = vpack.c.bf16 %v170_v50, %v168_v49  ;;  %v341_v58 = vpack.c.bf16 %v61_v52, %v60_v47 }
  0x34   :  { %356 = vmatprep.subr.bf16.mxu1 %v355_v42  ;;  %v62_v59 = vld [vmem:[#allocation2 + $0x60] sm:$0xff]  ;;  %v363_v60 = vpack.c.bf16 %v175_v54, %v173_v53  ;;  %v174_v62 = vld [vmem:[#allocation4 + $0x70] sm:$0xff]  ;;  %v343_v63 = vpack.c.bf16 %v79_v56, %v78_v55  ;;  %v63_v0 = vld [vmem:[#allocation2 + $0x68] sm:$0xff]  ;;  %v195_v42 = vshrl.u32 %v194_v41, 7 }
  0x35   :  { %v172_v61 = vld [vmem:[#allocation4 + $0x60] sm:$0xff]  ;;  %v177_v1 = vld [vmem:[#allocation4 + $0x88] sm:$0xff]  ;;  %v179_v2 = vld [vmem:[#allocation4 + $0x98] sm:$0xff]  ;;  %v345_v6 = vpack.c.bf16 %v63_v0, %v62_v59 }
  0x36   :  { %334 = vmatpush3.bf16.msra.mxu0 %v333_v30  ;;  %v80_v3 = vld [vmem:[#allocation2 + $0xf0] sm:$0xff]  ;;  %v81_v4 = vld [vmem:[#allocation2 + $0xf8] sm:$0xff]  ;;  %v365_v5 = vpack.c.bf16 %v174_v62, %v172_v61  ;;  %v367_v8 = vpack.c.bf16 %v179_v2, %v177_v1  ;;  %v176_v9 = vld [vmem:[#allocation4 + $0x80] sm:$0xff]  ;;  %v196_v43 = vsub.s32 0, %v195_v42 }
  0x37   :  { %336 = vmatprep.subr.bf16.mxu0 %v335_v36  ;;  %358 = vmatpush1.bf16.msra.mxu1 %v357_v45  ;;  %v64_v7 = vld [vmem:[#allocation2 + $0x70] sm:$0xff]  ;;  %v347_v11 = vpack.c.bf16 %v81_v4, %v80_v3  ;;  %v65_v12 = vld [vmem:[#allocation2 + $0x78] sm:$0xff]  ;;  %v181_v13 = vld [vmem:[#allocation4 + $0xa8] sm:$0xff]  ;;  %v200_v45 = vsub.s32 1, %v195_v42 }
  0x38   :  { %360 = vmatprep.subr.bf16.mxu1 %v359_v48  ;;  %v178_v10 = vld [vmem:[#allocation4 + $0x90] sm:$0xff]  ;;  %v183_v14 = vld [vmem:[#allocation4 + $0xb8] sm:$0xff]  ;;  %v349_v16 = vpack.c.bf16 %v65_v12, %v64_v7  ;;  %v180_v18 = vld [vmem:[#allocation4 + $0xa0] sm:$0xff] }
  0x39   :  { %v369_v15 = vpack.c.bf16 %v178_v10, %v176_v9  ;;  %v371_v17 = vpack.c.bf16 %v183_v14, %v181_v13  ;;  %v182_v19 = vld [vmem:[#allocation4 + $0xb0] sm:$0xff]  ;;  %v48_v21 = vld [vmem:[%s517_s0] sm:$0xff]  ;;  %v185_v22 = vld [vmem:[#allocation4 + $0xc8] sm:$0xff] }
  0x3a   :  { %338 = vmatpush3.bf16.msra.mxu0 %v337_v46  ;;  %v373_v20 = vpack.c.bf16 %v182_v19, %v180_v18  ;;  %v187_v23 = vld [vmem:[#allocation4 + $0xd8] sm:$0xff]  ;;  %v184_v25 = vld [vmem:[#allocation4 + $0xc0] sm:$0xff]  ;;  %v186_v26 = vld [vmem:[#allocation4 + $0xd0] sm:$0xff] }
  0x3b   :  { %340 = vmatprep.subr.bf16.mxu0 %v339_v51  ;;  %362 = vmatpush1.bf16.msra.mxu1 %v361_v57  ;;  %v375_v24 = vpack.c.bf16 %v187_v23, %v185_v22  ;;  %v377_v27 = vpack.c.bf16 %v186_v26, %v184_v25  ;;  %v189_v28 = vld [vmem:[#allocation4 + $0xe8] sm:$0xff]  ;;  %v191_v29 = vld [vmem:[#allocation4 + $0xf8] sm:$0xff]  ;;  %v188_v31 = vld [vmem:[#allocation4 + $0xe0] sm:$0xff] }
  0x3c   :  { %364 = vmatprep.subr.bf16.mxu1 %v363_v60  ;;  %v379_v30 = vpack.c.bf16 %v191_v29, %v189_v28  ;;  %v190_v32 = vld [vmem:[#allocation4 + $0xf0] sm:$0xff]  ;;  %v283_v36 = vld [vmem:[%s519_s2] ss:$0 sm:$0xff] }
  0x3d   :  { %v381_v33 = vpack.c.bf16 %v190_v32, %v188_v31  ;;  %v192_v44 = vld [vmem:[%s521_s4] sm:$0x3] }
  0x3e   :  { %342 = vmatpush3.bf16.msra.mxu0 %v341_v58  ;;  %v197_v46 = vrot.slane %v192_v44, %v196_v43  ;;  %v201_v47 = vrot.slane %v192_v44, %v200_v45 }
  0x3f   :  { %344 = vmatprep.subr.bf16.mxu0 %v343_v63  ;;  %366 = vmatpush1.bf16.msra.mxu1 %v365_v5 }
  0x40   :  { %368 = vmatprep.subr.bf16.mxu1 %v367_v8 }
  0x42   :  { %346 = vmatpush3.bf16.msra.mxu0 %v345_v6 }
  0x43   :  { %348 = vmatprep.subr.bf16.mxu0 %v347_v11  ;;  %370 = vmatpush1.bf16.msra.mxu1 %v369_v15 }
  0x44   :  { %372 = vmatprep.subr.bf16.mxu1 %v371_v17 }
  0x46   :  { %350 = vmatpush3.bf16.msra.mxu0 %v349_v16 }
  0x47   :  { %374 = vmatpush1.bf16.msra.mxu1 %v373_v20 }
  0x48   :  { %376 = vmatprep.subr.bf16.mxu1 %v375_v24 }
  0x49   :  { %154 = vmatmul.mubr.f32.vlgmr.msra.gmra.mrb[0].mxu0 %v48_v21 }
  0x4b   :  { %378 = vmatpush1.bf16.msra.mxu1 %v377_v27 }
  0x4c   :  { %380 = vmatprep.subr.bf16.mxu1 %v379_v30 }
  0x4f   :  { %382 = vmatpush1.bf16.msra.mxu1 %v381_v33 }
 0x11c   :  { %v316_v35 = vpop.f32.mrb[0].mxu0 }
 0x11d   :  { %v317_v37 = vpop.f32.mrb[1].mxu0 }
 0x11e   :  { %v318_v38 = vadd.f32 %v317_v37, %v316_v35 }
 0x120   :  { %v156_v39 = vadd.f32 %v318_v38, %v283_v36 }
 0x122   :  { %v159_v40 = vmax.f32 %v156_v39, 0.0 }
 0x124   :  { %269 = vmatmul.mubr.f32.vlgmr.msra.gmra.mrb[0].mxu1 %v159_v40 }
 0x1f7   :  { %v270_v48 = vpop.f32.mrb[0].mxu1 }
 0x1f8   :  { %v271_v49 = vadd.f32 %v270_v48, %v197_v46  ;;  %v272_v50 = vpop.f32.mrb[1].mxu1 }
 0x1f9   :  { %v273_v51 = vadd.f32 %v272_v50, %v201_v47 }
 0x1fa   :  { %275 = vst [vmem:[%s522_s5] sm:$0xff] %v271_v49 }
 0x1fb   :  { %276 = vst [vmem:[%s522_s5 + $0x8] sm:$0xff] %v273_v51 }
 0x1fc   :  { %281 = vsyncpa [#allocation3], 1 }
 0x1fd   :  { %282 = vsyncpa [#allocation5], 1 }

</bundles_post_ra>
